<compile_context>
chip_gen: v7x
topology: tpu7x:2x2x1
jax: 0.10.0
libtpu: 0.0.40
codegen_flags: <defaults>
</compile_context>

<pallas_src>
import math
import functools

import jax
import jax.numpy as jnp
from jax import lax
from jax.experimental import pallas as pl
from jax.experimental.pallas import tpu as pltpu

HEAD_DIM = 64
NUM_GROUPS = 32
EPS = 1e-6


def _pick_tile(s, pref):
    """Largest multiple-of-8 divisor of s that is <= pref, else s (full dim)."""
    if s <= pref:
        return s
    for t in range(pref, 7, -1):
        if s % t == 0 and t % 8 == 0:
            return t
    return s


# ---------------------------------------------------------------------------
# Pass 1: GroupNorm statistics (per-batch column sums / sums of squares).
# ---------------------------------------------------------------------------
def stats_kernel(x_ref, s1_ref, s2_ref):
    xt = x_ref[0]                                          # (ts, C) f32
    s1 = jnp.sum(xt, axis=0, keepdims=True)                # (1, C)
    s2 = jnp.sum(xt * xt, axis=0, keepdims=True)           # (1, C)

    @pl.when(pl.program_id(1) == 0)
    def _():
        s1_ref[0] = s1
        s2_ref[0] = s2

    @pl.when(pl.program_id(1) != 0)
    def _():
        s1_ref[0] += s1
        s2_ref[0] += s2


# ---------------------------------------------------------------------------
# Pass 2: fused GroupNorm affine + QKV 1x1 conv, head-major outputs.
# ---------------------------------------------------------------------------
def qkv_kernel(x_ref, a_ref, b_ref, wq_ref, wk_ref, wv_ref,
               q_ref, k_ref, v_ref, *, num_heads, compute_dtype):
    h = x_ref[0] * a_ref[0] + b_ref[0]                     # (ts, C) f32, fused affine
    hc = h.astype(compute_dtype)
    for hh in range(num_heads):                            # static, small (C/64 heads)
        q_ref[0, hh] = jnp.dot(hc, wq_ref[hh],
                               preferred_element_type=jnp.float32).astype(q_ref.dtype)
        k_ref[0, hh] = jnp.dot(hc, wk_ref[hh],
                               preferred_element_type=jnp.float32).astype(k_ref.dtype)
        v_ref[0, hh] = jnp.dot(hc, wv_ref[hh],
                               preferred_element_type=jnp.float32).astype(v_ref.dtype)


# ---------------------------------------------------------------------------
# Pass 3: flash attention + proj_out + residual.
# grid = (B, n_q_tiles, num_heads, n_kv_tiles)
# ---------------------------------------------------------------------------
def flash_kernel(q_ref, k_ref, v_ref, x_ref, wp_ref, o_ref,
                 m_sc, l_sc, acc_sc, proj_sc, *, compute_dtype):
    hh = pl.program_id(2)
    ki = pl.program_id(3)
    n_heads = pl.num_programs(2)
    n_kv = pl.num_programs(3)

    @pl.when(jnp.logical_and(hh == 0, ki == 0))
    def _():
        proj_sc[...] = jnp.zeros_like(proj_sc)

    @pl.when(ki == 0)
    def _():
        m_sc[...] = jnp.full_like(m_sc, -jnp.inf)
        l_sc[...] = jnp.zeros_like(l_sc)
        acc_sc[...] = jnp.zeros_like(acc_sc)

    q = q_ref[0, 0]                                        # (tq, D), scale pre-folded
    k = k_ref[0, 0]                                        # (tk, D)
    v = v_ref[0, 0]                                        # (tk, D)

    # q @ k^T with direct last-dim contraction (no transpose materialized).
    s = lax.dot_general(q, k, (((1,), (1,)), ((), ())),
                        preferred_element_type=jnp.float32)            # (tq, tk) f32

    m_prev = m_sc[...]
    m_new = jnp.maximum(m_prev, jnp.max(s, axis=-1, keepdims=True))    # (tq, 1)
    alpha = jnp.exp(m_prev - m_new)
    p = jnp.exp(s - m_new)                                             # unnormalized
    l_sc[...] = alpha * l_sc[...] + jnp.sum(p, axis=-1, keepdims=True)
    acc_sc[...] = alpha * acc_sc[...] + jnp.dot(
        p.astype(compute_dtype), v, preferred_element_type=jnp.float32)
    m_sc[...] = m_new

    # Deferred softmax normalization + per-head projection accumulation.
    @pl.when(ki == n_kv - 1)
    def _():
        o_h = acc_sc[...] * pl.reciprocal(l_sc[...], approx=True)      # (tq, D) f32
        proj_sc[...] += jnp.dot(o_h.astype(compute_dtype), wp_ref[0],
                                preferred_element_type=jnp.float32)    # (tq, C)

    @pl.when(jnp.logical_and(hh == n_heads - 1, ki == n_kv - 1))
    def _():
        o_ref[0] = x_ref[0] + proj_sc[...]


# ---------------------------------------------------------------------------
# Host wrapper.
# ---------------------------------------------------------------------------
def attn_block(x_nchw, gamma, beta, w_qkv, w_proj, *,
               use_bf16=True, tq=256, tk=256, ts=256):
    B, C, H, W = x_nchw.shape
    assert C % HEAD_DIM == 0 and C % NUM_GROUPS == 0
    S = H * W
    num_heads = C // HEAD_DIM
    cg = C // NUM_GROUPS
    compute_dtype = jnp.bfloat16 if use_bf16 else jnp.float32

    tq = _pick_tile(S, tq)
    tk = _pick_tile(S, tk)
    ts = _pick_tile(S, ts)

    # NCHW -> (B, S, C) channels-last, f32.
    x = jnp.transpose(x_nchw, (0, 2, 3, 1)).reshape(B, S, C).astype(jnp.float32)

    # ---- pass 1: GroupNorm statistics ----
    colsum, colsum2 = pl.pallas_call(
        stats_kernel,
        out_shape=(jax.ShapeDtypeStruct((B, 1, C), jnp.float32),
                   jax.ShapeDtypeStruct((B, 1, C), jnp.float32)),
        grid_spec=pltpu.PrefetchScalarGridSpec(
            num_scalar_prefetch=0,
            grid=(B, S // ts),
            in_specs=[pl.BlockSpec((1, ts, C), lambda b, si: (b, si, 0))],
            out_specs=(pl.BlockSpec((1, 1, C), lambda b, si: (b, 0, 0)),
                       pl.BlockSpec((1, 1, C), lambda b, si: (b, 0, 0))),
        ),
        compiler_params=pltpu.CompilerParams(
            dimension_semantics=("parallel", "arbitrary")),
    )(x)

    # ---- tiny per-group combine + affine fold (host side, (B,C)-sized) ----
    n = float(S * cg)
    gsum = colsum.reshape(B, NUM_GROUPS, cg).sum(axis=-1, keepdims=True)    # (B,G,1)
    gsum2 = colsum2.reshape(B, NUM_GROUPS, cg).sum(axis=-1, keepdims=True)
    mean = gsum / n
    var = gsum2 / n - mean * mean
    inv = lax.rsqrt(var + EPS)
    gamma_g = gamma.reshape(1, NUM_GROUPS, cg).astype(jnp.float32)
    beta_g = beta.reshape(1, NUM_GROUPS, cg).astype(jnp.float32)
    a_g = inv * gamma_g                                                     # (B,G,cg)
    a_scale = a_g.reshape(B, 1, C)
    b_shift = (beta_g - mean * a_g).reshape(B, 1, C)

    # ---- weight prep: (out,in,1,1) conv weights -> per-head layouts ----
    scale = 1.0 / math.sqrt(HEAD_DIM)
    wq = jnp.transpose(w_qkv[0:C, :, 0, 0]).astype(jnp.float32) * scale     # scale folded
    wk = jnp.transpose(w_qkv[C:2 * C, :, 0, 0]).astype(jnp.float32)
    wv = jnp.transpose(w_qkv[2 * C:3 * C, :, 0, 0]).astype(jnp.float32)
    wq_h = wq.reshape(C, num_heads, HEAD_DIM).transpose(1, 0, 2).astype(compute_dtype)
    wk_h = wk.reshape(C, num_heads, HEAD_DIM).transpose(1, 0, 2).astype(compute_dtype)
    wv_h = wv.reshape(C, num_heads, HEAD_DIM).transpose(1, 0, 2).astype(compute_dtype)
    wp = jnp.transpose(w_proj[:, :, 0, 0]).astype(jnp.float32)              # (Cin, Cout)
    wp_h = wp.reshape(num_heads, HEAD_DIM, C).astype(compute_dtype)         # (H, D, Cout)

    # ---- pass 2: fused norm + QKV projection ----
    q_all, k_all, v_all = pl.pallas_call(
        functools.partial(qkv_kernel, num_heads=num_heads, compute_dtype=compute_dtype),
        out_shape=tuple(jax.ShapeDtypeStruct((B, num_heads, S, HEAD_DIM), compute_dtype)
                        for _ in range(3)),
        grid_spec=pltpu.PrefetchScalarGridSpec(
            num_scalar_prefetch=0,
            grid=(B, S // ts),
            in_specs=[
                pl.BlockSpec((1, ts, C), lambda b, si: (b, si, 0)),                  # x
                pl.BlockSpec((1, 1, C), lambda b, si: (b, 0, 0)),                    # a
                pl.BlockSpec((1, 1, C), lambda b, si: (b, 0, 0)),                    # b
                pl.BlockSpec((num_heads, C, HEAD_DIM), lambda b, si: (0, 0, 0)),     # wq
                pl.BlockSpec((num_heads, C, HEAD_DIM), lambda b, si: (0, 0, 0)),     # wk
                pl.BlockSpec((num_heads, C, HEAD_DIM), lambda b, si: (0, 0, 0)),     # wv
            ],
            out_specs=tuple(pl.BlockSpec((1, num_heads, ts, HEAD_DIM),
                                         lambda b, si: (b, 0, si, 0))
                            for _ in range(3)),
        ),
        compiler_params=pltpu.CompilerParams(
            dimension_semantics=("parallel", "parallel")),
    )(x, a_scale, b_shift, wq_h, wk_h, wv_h)

    # ---- pass 3: flash attention + proj_out + residual ----
    out = pl.pallas_call(
        functools.partial(flash_kernel, compute_dtype=compute_dtype),
        out_shape=jax.ShapeDtypeStruct((B, S, C), jnp.float32),
        grid_spec=pltpu.PrefetchScalarGridSpec(
            num_scalar_prefetch=0,
            grid=(B, S // tq, num_heads, S // tk),
            in_specs=[
                pl.BlockSpec((1, 1, tq, HEAD_DIM), lambda b, qi, h, ki: (b, h, qi, 0)),  # q
                pl.BlockSpec((1, 1, tk, HEAD_DIM), lambda b, qi, h, ki: (b, h, ki, 0)),  # k
                pl.BlockSpec((1, 1, tk, HEAD_DIM), lambda b, qi, h, ki: (b, h, ki, 0)),  # v
                pl.BlockSpec((1, tq, C), lambda b, qi, h, ki: (b, qi, 0)),               # x (residual)
                pl.BlockSpec((1, HEAD_DIM, C), lambda b, qi, h, ki: (h, 0, 0)),          # wp
            ],
            out_specs=pl.BlockSpec((1, tq, C), lambda b, qi, h, ki: (b, qi, 0)),
            scratch_shapes=[
                pltpu.VMEM((tq, 1), jnp.float32),          # running max m
                pltpu.VMEM((tq, 1), jnp.float32),          # running sum l
                pltpu.VMEM((tq, HEAD_DIM), jnp.float32),   # unnormalized head acc
                pltpu.VMEM((tq, C), jnp.float32),          # proj accumulator over heads
            ],
        ),
        compiler_params=pltpu.CompilerParams(
            dimension_semantics=("parallel", "parallel", "arbitrary", "arbitrary")),
    )(q_all, k_all, v_all, x, wp_h)

    # (B, S, C) -> NCHW
    return jnp.transpose(out.reshape(B, H, W, C), (0, 3, 1, 2))


# ---------------------------------------------------------------------------
# Plain-JAX reference matching the PyTorch semantics (NCHW).
# ---------------------------------------------------------------------------
def attn_block_reference(x, gamma, beta, w_qkv, w_proj):
    B, C, H, W = x.shape
    cg = C // NUM_GROUPS
    xr = x.reshape(B, NUM_GROUPS, cg, H, W)
    mean = xr.mean(axis=(2, 3, 4), keepdims=True)
    var = xr.var(axis=(2, 3, 4), keepdims=True)
    hn = (xr - mean) / jnp.sqrt(var + EPS)
    hn = hn.reshape(B, C, H, W) * gamma[None, :, None, None] + beta[None, :, None, None]

    qkv = jnp.einsum('oc,bchw->bohw', w_qkv[:, :, 0, 0], hn)
    q, k, v = jnp.split(qkv, 3, axis=1)

    nh = C // HEAD_DIM
    S = H * W

    def rearr(t):  # b (h d) x y -> b h (x y) d
        return t.reshape(B, nh, HEAD_DIM, S).transpose(0, 1, 3, 2)

    q, k, v = rearr(q), rearr(k), rearr(v)
    s = jnp.einsum('bhsd,bhtd->bhst', q, k) / math.sqrt(HEAD_DIM)
    p = jax.nn.softmax(s, axis=-1)
    o = jnp.einsum('bhst,bhtd->bhsd', p, v)
    o = o.transpose(0, 1, 3, 2).reshape(B, C, H, W)
    proj = jnp.einsum('oc,bchw->bohw', w_proj[:, :, 0, 0], o)
    return x + proj


if __name__ == "__main__":
    # Small shapes consistent with the module: in_channels must be a multiple of
    # head_dim=64 and num_groups=32 -> C=128 (2 heads), 16x16 spatial so that the
    # flash tiling (tq=tk=ts=128, S=256) actually exercises multi-tile paths.
    B, C, H, W = 2, 128, 16, 16

    key = jax.random.PRNGKey(0)
    kx, kq, kp, kg, kb = jax.random.split(key, 5)

    x = jax.random.normal(kx, (B, C, H, W), dtype=jnp.float32)
    w_qkv = 0.05 * jax.random.normal(kq, (3 * C, C, 1, 1), dtype=jnp.float32)
    w_proj = (0.2 / math.sqrt(C)) * jax.random.normal(kp, (C, C, 1, 1), dtype=jnp.float32)
    gamma = 1.0 + 0.1 * jax.random.normal(kg, (C,), dtype=jnp.float32)
    beta = 0.1 * jax.random.normal(kb, (C,), dtype=jnp.float32)

    ref = attn_block_reference(x, gamma, beta, w_qkv, w_proj)

    # f32 matmul path (tight tolerance; approx reciprocal allowed a little slack).
    out_f32 = attn_block(x, gamma, beta, w_qkv, w_proj,
                         use_bf16=False, tq=128, tk=128, ts=128)
    out_f32 = jax.block_until_ready(out_f32)
    assert out_f32.shape == (B, C, H, W)
    err32 = float(jnp.max(jnp.abs(out_f32 - ref)))
    assert jnp.allclose(out_f32, ref, rtol=2e-3, atol=2e-3), f"f32 max abs err = {err32}"

    # bf16 MXU path (f32 accumulation / f32 elementwise), looser tolerance.
    out_bf16 = attn_block(x, gamma, beta, w_qkv, w_proj,
                          use_bf16=True, tq=128, tk=128, ts=128)
    out_bf16 = jax.block_until_ready(out_bf16)
    errbf = float(jnp.max(jnp.abs(out_bf16 - ref)))
    assert jnp.allclose(out_bf16, ref, rtol=3e-2, atol=3e-2), f"bf16 max abs err = {errbf}"

    print("KERNEL_OK")
</pallas_src>

<mosaic_0001>
module attributes {stable_mosaic.version = 11 : i64} {
  func.func @stats_kernel(%arg0: i32, %arg1: i32, %arg2: memref<1x128x128xf32, #tpu.memory_space<vmem>>, %arg3: memref<1x1x128xf32, #tpu.memory_space<vmem>>, %arg4: memref<1x1x128xf32, #tpu.memory_space<vmem>>) attributes {dimension_semantics = [#tpu.dimension_semantics<parallel>, #tpu.dimension_semantics<arbitrary>], iteration_bounds = array<i64: 2, 2>, scalar_prefetch = 0 : i64, scratch_operands = 0 : i64, tpu.core_type = #tpu.core_type<tc>, window_params = [{transform_indices = @transform_0, window_bounds = array<i64: 1, 128, 128>}, {transform_indices = @transform_1, window_bounds = array<i64: 1, 1, 128>}, {transform_indices = @transform_2, window_bounds = array<i64: 1, 1, 128>}]} {
    %c0 = arith.constant 0 : index
    %c0_0 = arith.constant 0 : index
    %c0_1 = arith.constant 0 : index
    %0 = vector.load %arg2[%c0, %c0_0, %c0_1] : memref<1x128x128xf32, #tpu.memory_space<vmem>>, vector<1x128x128xf32>
    %1 = vector.shape_cast %0 : vector<1x128x128xf32> to vector<128x128xf32>
    %cst = arith.constant dense<0.000000e+00> : vector<128xf32>
    %2 = vector.multi_reduction <add>, %1, %cst [0] : vector<128x128xf32> to vector<128xf32>
    %3 = vector.shape_cast %2 : vector<128xf32> to vector<1x128xf32>
    %4 = arith.mulf %1, %1 : vector<128x128xf32>
    %cst_2 = arith.constant dense<0.000000e+00> : vector<128xf32>
    %5 = vector.multi_reduction <add>, %4, %cst_2 [0] : vector<128x128xf32> to vector<128xf32>
    %6 = vector.shape_cast %5 : vector<128xf32> to vector<1x128xf32>
    %c0_i32 = arith.constant 0 : i32
    %7 = arith.cmpi eq, %arg1, %c0_i32 : i32
    %8 = arith.extui %7 : i1 to i32
    %c0_i32_3 = arith.constant 0 : i32
    %9 = arith.cmpi ne, %8, %c0_i32_3 : i32
    scf.if %9 {
      %c0_6 = arith.constant 0 : index
      %c0_7 = arith.constant 0 : index
      %c0_8 = arith.constant 0 : index
      %13 = vector.load %arg3[%c0_6, %c0_7, %c0_8] : memref<1x1x128xf32, #tpu.memory_space<vmem>>, vector<1x1x128xf32>
      %14 = vector.shape_cast %13 : vector<1x1x128xf32> to vector<1x128xf32>
      %15 = vector.shape_cast %3 : vector<1x128xf32> to vector<1x1x128xf32>
      tpu.vector_store %arg3[%c0_6, %c0_7, %c0_8], %15 {strides = array<i32>} : memref<1x1x128xf32, #tpu.memory_space<vmem>>, vector<1x1x128xf32>,
      %c0_9 = arith.constant 0 : index
      %c0_10 = arith.constant 0 : index
      %c0_11 = arith.constant 0 : index
      %16 = vector.load %arg4[%c0_9, %c0_10, %c0_11] : memref<1x1x128xf32, #tpu.memory_space<vmem>>, vector<1x1x128xf32>
      %17 = vector.shape_cast %16 : vector<1x1x128xf32> to vector<1x128xf32>
      %18 = vector.shape_cast %6 : vector<1x128xf32> to vector<1x1x128xf32>
      tpu.vector_store %arg4[%c0_9, %c0_10, %c0_11], %18 {strides = array<i32>} : memref<1x1x128xf32, #tpu.memory_space<vmem>>, vector<1x1x128xf32>,
    } else {
    }
    %c0_i32_4 = arith.constant 0 : i32
    %10 = arith.cmpi ne, %arg1, %c0_i32_4 : i32
    %11 = arith.extui %10 : i1 to i32
    %c0_i32_5 = arith.constant 0 : i32
    %12 = arith.cmpi ne, %11, %c0_i32_5 : i32
    scf.if %12 {
      %c0_6 = arith.constant 0 : index
      %c0_7 = arith.constant 0 : index
      %c0_8 = arith.constant 0 : index
      %13 = vector.load %arg3[%c0_6, %c0_7, %c0_8] : memref<1x1x128xf32, #tpu.memory_space<vmem>>, vector<1x1x128xf32>
      %14 = vector.shape_cast %13 : vector<1x1x128xf32> to vector<1x128xf32>
      %15 = arith.addf %14, %3 : vector<1x128xf32>
      %c0_9 = arith.constant 0 : index
      %c0_10 = arith.constant 0 : index
      %c0_11 = arith.constant 0 : index
      %16 = vector.load %arg3[%c0_9, %c0_10, %c0_11] : memref<1x1x128xf32, #tpu.memory_space<vmem>>, vector<1x1x128xf32>
      %17 = vector.shape_cast %16 : vector<1x1x128xf32> to vector<1x128xf32>
      %18 = vector.shape_cast %15 : vector<1x128xf32> to vector<1x1x128xf32>
      tpu.vector_store %arg3[%c0_9, %c0_10, %c0_11], %18 {strides = array<i32>} : memref<1x1x128xf32, #tpu.memory_space<vmem>>, vector<1x1x128xf32>,
      %c0_12 = arith.constant 0 : index
      %c0_13 = arith.constant 0 : index
      %c0_14 = arith.constant 0 : index
      %19 = vector.load %arg4[%c0_12, %c0_13, %c0_14] : memref<1x1x128xf32, #tpu.memory_space<vmem>>, vector<1x1x128xf32>
      %20 = vector.shape_cast %19 : vector<1x1x128xf32> to vector<1x128xf32>
      %21 = arith.addf %20, %6 : vector<1x128xf32>
      %c0_15 = arith.constant 0 : index
      %c0_16 = arith.constant 0 : index
      %c0_17 = arith.constant 0 : index
      %22 = vector.load %arg4[%c0_15, %c0_16, %c0_17] : memref<1x1x128xf32, #tpu.memory_space<vmem>>, vector<1x1x128xf32>
      %23 = vector.shape_cast %22 : vector<1x1x128xf32> to vector<1x128xf32>
      %24 = vector.shape_cast %21 : vector<1x128xf32> to vector<1x1x128xf32>
      tpu.vector_store %arg4[%c0_15, %c0_16, %c0_17], %24 {strides = array<i32>} : memref<1x1x128xf32, #tpu.memory_space<vmem>>, vector<1x1x128xf32>,
    } else {
    }
    return
  }
  func.func @transform_0(%arg0: i32, %arg1: i32) -> (i32, i32, i32) {
    %c0_i32 = arith.constant 0 : i32
    %c0_i32_0 = arith.constant 0 : i32
    return %arg0, %arg1, %c0_i32 : i32, i32, i32
  }
  func.func @transform_1(%arg0: i32, %arg1: i32) -> (i32, i32, i32) {
    %c0_i32 = arith.constant 0 : i32
    %c0_i32_0 = arith.constant 0 : i32
    %c0_i32_1 = arith.constant 0 : i32
    return %arg0, %c0_i32, %c0_i32_0 : i32, i32, i32
  }
  func.func @transform_2(%arg0: i32, %arg1: i32) -> (i32, i32, i32) {
    %c0_i32 = arith.constant 0 : i32
    %c0_i32_0 = arith.constant 0 : i32
    %c0_i32_1 = arith.constant 0 : i32
    return %arg0, %c0_i32, %c0_i32_0 : i32, i32, i32
  }
}

</mosaic_0001>

<bundles_post_ra>
// kernel: tpu_custom_call.1
= control target key start
LH: loop header
LB: loop body
LE: loop exit
PB: predicated region body
PF: predicated region fallthrough
CT: control target
= control target key end

     0   :  { %8 = vsyncpa [#allocation3], 0  ;;  %s1016_s0 = inlined_call_operand.hbm [shape: f32[2,256,128], index: 0, kind: input, shape index: {}]   ;;  %s1017_s1 = inlined_call_operand.hbm [shape: f32[2,1,128], index: 1, kind: output, shape index: {0}]   ;;  %s1018_s2 = inlined_call_operand.hbm [shape: f32[2,1,128], index: 2, kind: output, shape index: {1}]  }
   0x1   :  { %10 = vsyncpa [#allocation3 + $0x1], 0 }
   0x2   :  { %11 = vsyncpa [#allocation4], 0 }
   0x3   :  { %13 = vsyncpa [#allocation4 + $0x1], 0 }
   0x4   :  { %14 = vsyncpa [#allocation7], 0 }
   0x5   :  { %16 = vsyncpa [#allocation7 + $0x1], 0  ;;  %s747_s9 = smov 0   ;;  %s749_s10 = smov 0  }
   0x6   :  { %s751_s11 = smov 0   ;;  %s753_s12 = smov 0  }
   0x7   :  { %s755_s13 = smov 0   ;;  %s757_s14 = smov 0  }
   0x8   :  { %s759_s15 = smov 0   ;;  %s761_s16 = smov 0  }
   0x9   :  { %s763_s17 = smov 0   ;;  %s765_s18 = smov 0  }
   0xa   :  { %s767_s19 = smov 0  }
   0xb LB: > { %s416_s20 = sadd.s32 4294967295, %s725_s19   ;;  %s417_s21 = sadd.s32 4294967294, %s725_s19   ;;  %s725_s19 = sphi %s767_s19, %s22_s19   ;;  %s721_s18 = sphi %s765_s18, %s1042_s18   ;;  %s717_s17 = sphi %s763_s17, %s1041_s17   ;;  %s713_s16 = sphi %s761_s16, %s1040_s16   ;;  %s709_s15 = sphi %s759_s15, %s1039_s15   ;;  %s705_s14 = sphi %s757_s14, %s1038_s14   ;;  %s701_s13 = sphi %s755_s13, %s1037_s13   ;;  %s697_s12 = sphi %s753_s12, %s1036_s12   ;;  %s693_s11 = sphi %s751_s11, %s1035_s11   ;;  %s689_s10 = sphi %s749_s10, %s1034_s10   ;;  %s685_s9 = sphi %s747_s9, %s1033_s9  }
   0xc   : > { %s31_s22 = sadd.s32 1, %s717_s17  ;;  %s34_s23 = sadd.s32 1, %s721_s18 }
   0xd   : > { %p32_p0 = scmp.ge.s32.totalorder %s31_s22, 2  ;;  %s43_s24 = sadd.s32 1, %s705_s14 }
   0xe   : > { %p50_p1 = scmp.ne.s32.totalorder %s705_s14, %s701_s13  ;;  %p51_p2 = scmp.eq.s32.totalorder %s725_s19, 0 }
   0xf   : > { %s1044_s22 = smov (%p32_p0, %s31_s22), 0  ;;  %s1046_s23 = smov (!%p32_p0, %s34_s23), %s721_s18 }
  0x10   : > { %1022 = sst [smem:[#allocation11_spill]] %s1044_s22  ;;  %s39_s25 = ssub.s32 %s717_s17, %s1044_s22 }
  0x11   : > { %p813_p3 = por %p51_p2, %p50_p1  ;;  %p36_p4 = scmp.ge.s32.totalorder %s1046_s23, 2 }
  0x12   : > { %p56_p5 = scmp.ne.s32.totalorder %s701_s13, %s697_s12  ;;  %p57_p6 = scmp.eq.s32.totalorder %s416_s20, 0 }
  0x13   : > { %s69_s27 = sadd.s32 1, %s693_s11  ;;  %s1048_s23 = smov (%p36_p4, %s1046_s23), 0 }
  0x14   : > { %1024 = sst [smem:[#allocation12_spill]] %s1048_s23  ;;  %p821_p7 = por %p57_p6, %p56_p5 }
  0x15   : > { %p79_p8 = scmp.ne.s32.totalorder %s693_s11, %s689_s10  ;;  %s38_s29 = ssub.s32 %s721_s18, %s1048_s23 }
  0x16   : > { %p80_p9 = scmp.eq.s32.totalorder %s416_s20, 3  ;;  %s40_s30 = sor.u32 %s39_s25, %s38_s29 }
  0x17   : > { %p67_p10 = scmp.eq.s32.totalorder %s38_s29, 0  ;;  %p41_p11 = scmp.eq.s32.totalorder %s40_s30, 0 }
  0x18   : > { %p829_p12 = por %p80_p9, %p79_p8  ;;  %p85_p13 = scmp.ne.s32.totalorder %s689_s10, %s685_s9 }
  0x19   : > { %s834_s4 = scalar_select %p67_p10, %s693_s11, %s69_s27  }
  0x1a   : > { %s1026_s3 = scalar_select %p829_p12, 1, 0 }
  0x1b   : > { %s837_s5 = scalar_select %p41_p11, %s705_s14, %s43_s24  }
  0x1c   : > { %p86_p0 = scmp.eq.s32.totalorder %s417_s21, 3  ;;  %p449_p1 = scmp.lt.s32.totalorder %s725_s19, 4 }
  0x1d   : > { %s132_s7 = sand.u32 1, %s705_s14   ;;  %s421_s12 = sshll.u32 %s717_s17, 4 }
  0x1e   : > { %p842_p2 = por %p86_p0, %p85_p13  ;;  %s420_s8 = sshll.u32 %s132_s7, 7 }
  0x1f   : > { %s422_s20 = sshll.u32 %s721_s18, 5  ;;  %s136_s25 = scalar_lea.vmem [#allocation2], %s420_s8 }
  0x20   : > { %s1027_s6 = scalar_select %p842_p2, 1, 0 }
  0x21   : > { %s145_s29 = sshll.u32 %s136_s25, 4  ;;  %s142_s30 = sadd.s32 %s422_s20, %s421_s12  ;;  %s849_s29 = int_to_ptr.vmem [resolvable:$true] %s145_s29 }
  0x22   : > { %s423_s27 = sshll.u32 %s142_s30, 7  ;;  %p853_p4 = pnand %p449_p1, %p813_p3 }
  0x23   : > { %s860_s22 = scalar_lea.hbm %s1016_s0, %s423_s27  ;;  %s862_s8 = scalar_lea.sflag [#allocation3], %s132_s7 }
  0x24   : > { %s541_s12 = scalar_lea.hbm %s860_s22, 2048  ;;  %p543_p3 = pneg %p853_p4 }
  0x25   : > { %p542_p5 = scmp.ne.s32.totalorder %s860_s22, %s541_s12  ;;  %s546_s20 = scalar_lea.hbm %s1016_s0, 8192 }
  0x26   : > { %p547_p9 = scmp.lt.u32.totalorder %s860_s22, %s1016_s0  ;;  %p548_p10 = scmp.lt.u32.totalorder %s546_s20, %s541_s12 }
  0x27   : > { %p544_p6 = pnand %p543_p3, %p542_p5  ;;  %p550_p13 = scmp.lt.u32.totalorder %s541_s12, %s860_s22 }
  0x28   : > { %p549_p11 = por %p548_p10, %p547_p9 }
  0x29   : > { %p545_p8 = pneg %p544_p6 }
  0x2a   : > { %p551_p0 = por %p550_p13, %p549_p11 }
  0x2c   : > { %p552_p1 = pnand %p551_p0, %p545_p8 }
  0x2e   : > { %555 = shalt.err (!%p552_p1)
}
  0x2f   : > { %s556_s7 = scalar_lea.vmem %s849_s29, 2048  ;;  %s727_s27 = smov [#allocation2]  }
  0x30   : > { %p557_p5 = scmp.ne.s32.totalorder %s849_s29, %s556_s7  ;;  %s561_s21 = sshll.u32 %s727_s27, 4  ;;  %s562_s21 = int_to_ptr.vmem [resolvable:$false] %s561_s21 }
  0x31   : > { %s563_s26 = scalar_lea.vmem %s562_s21, 4096  ;;  %p564_p12 = scmp.lt.s32.totalorder %s849_s29, %s562_s21 }
  0x32   : > { %p559_p6 = pnand %p557_p5, %p543_p3  ;;  %p565_p9 = scmp.lt.s32.totalorder %s563_s26, %s556_s7 }
  0x34   : > { %p560_p2 = pneg %p559_p6  ;;  %p566_p10 = por %p565_p9, %p564_p12 }
  0x36   : > { %p567_p11 = pnand %p566_p10, %p560_p2 }
  0x38   : > { %570 = shalt.err (!%p567_p11)
}
  0x39   : > { %s728_s12 = smov 128   ;;  %s729_s23 = smov 8  }
  0x3a   : > { %441 = dma.hbm_to_vmem [thread:$0]  (!%p853_p4), %s860_s22, 2048, %s849_s29, %s862_s8, %s728_s12, %s728_s12, %s729_s23  }
  0x3b   : > { %p424_p3 = scmp.ge.s32.totalorder %s725_s19, 1  ;;  %p153_p8 = scmp.lt.s32.totalorder %s725_s19, 5 }
  0x3d   : > { %p154_p13 = pnand %p424_p3, %p153_p8 }
  0x3e   : > { %s159_s20 = sand.u32 (!%p154_p13), 1, %s701_s13  }
  0x3f   : > { %157 = sbr.rel (%p154_p13) target bundleno = 177 (0xb1), region = 24  ;;  %s425_s25 = sshll.u32 (!%p154_p13), %s159_s20, 7 }
  0x40   : > { %s160_s30 = scalar_lea.sflag (!%p154_p13), [#allocation3], %s159_s20  ;;  %s893_s7 = scalar_lea.vmem (!%p154_p13), [#allocation2], %s425_s25 }
  0x46   : > { %672 = dma.done.wait (%p821_p7), %s160_s30, 2048  }
  0x47   : > { %674 = vsyncadd (%p821_p7), %s160_s30, 4294965248  ;;  %s900_s22 = sand.u32 1, %s689_s10   ;;  %v188_v0 = vld [vmem:[%s893_s7] sm:$0xff]  ;;  %v189_v1 = vld [vmem:[%s893_s7 + $0x8] sm:$0xff]  ;;  %p426_p7 = scmp.ne.s32.totalorder %s709_s15, 0 }
  0x48   : > { %v190_v2 = vld [vmem:[%s893_s7 + $0x10] sm:$0xff]  ;;  %v191_v3 = vld [vmem:[%s893_s7 + $0x18] sm:$0xff]  ;;  %v204_v4 = vadd.f32 %v189_v1, %v188_v0  ;;  %v225_v5 = vmul.f32 %v188_v0, %v188_v0  ;;  %v226_v6 = vmul.f32 %v189_v1, %v189_v1  ;;  %v192_v8 = vld [vmem:[%s893_s7 + $0x20] sm:$0xff]  ;;  %s180_s28 = scalar_lea.vmem [#allocation5], %s900_s22  ;;  %s920_s29 = scalar_lea.vmem [#allocation6], %s900_s22 }
  0x49   : > { %v227_v7 = vmul.f32 %v190_v2, %v190_v2  ;;  %v228_v10 = vmul.f32 %v191_v3, %v191_v3  ;;  %v193_v12 = vld [vmem:[%s893_s7 + $0x28] sm:$0xff]  ;;  %v229_v14 = vmul.f32 %v192_v8, %v192_v8  ;;  %v194_v16 = vld [vmem:[%s893_s7 + $0x30] sm:$0xff]  ;;  %v195_v20 = vld [vmem:[%s893_s7 + $0x38] sm:$0xff] }
  0x4a   : > { %v205_v9 = vadd.f32 %v204_v4, %v190_v2  ;;  %v241_v11 = vadd.f32 %v226_v6, %v225_v5  ;;  %v230_v18 = vmul.f32 %v193_v12, %v193_v12  ;;  %v231_v22 = vmul.f32 %v194_v16, %v194_v16  ;;  %v196_v24 = vld [vmem:[%s893_s7 + $0x40] sm:$0xff]  ;;  %v197_v28 = vld [vmem:[%s893_s7 + $0x48] sm:$0xff]  ;;  %v198_v32 = vld [vmem:[%s893_s7 + $0x50] sm:$0xff] }
  0x4b   : > { %v232_v26 = vmul.f32 %v195_v20, %v195_v20  ;;  %v233_v30 = vmul.f32 %v196_v24, %v196_v24  ;;  %v234_v34 = vmul.f32 %v197_v28, %v197_v28  ;;  %v199_v36 = vld [vmem:[%s893_s7 + $0x58] sm:$0xff]  ;;  %v235_v38 = vmul.f32 %v198_v32, %v198_v32  ;;  %v200_v40 = vld [vmem:[%s893_s7 + $0x60] sm:$0xff]  ;;  %v201_v44 = vld [vmem:[%s893_s7 + $0x68] sm:$0xff] }
  0x4c   : > { %v206_v13 = vadd.f32 %v205_v9, %v191_v3  ;;  %v242_v15 = vadd.f32 %v241_v11, %v227_v7  ;;  %v236_v42 = vmul.f32 %v199_v36, %v199_v36  ;;  %v237_v46 = vmul.f32 %v200_v40, %v200_v40  ;;  %v202_v48 = vld [vmem:[%s893_s7 + $0x70] sm:$0xff]  ;;  %v203_v52 = vld [vmem:[%s893_s7 + $0x78] sm:$0xff] }
  0x4d   : > { %v238_v50 = vmul.f32 %v201_v44, %v201_v44  ;;  %v239_v54 = vmul.f32 %v202_v48, %v202_v48  ;;  %v240_v57 = vmul.f32 %v203_v52, %v203_v52 }
  0x4e   : > { %v207_v17 = vadd.f32 %v206_v13, %v192_v8  ;;  %v243_v19 = vadd.f32 %v242_v15, %v228_v10 }
  0x50   : > { %v208_v21 = vadd.f32 %v207_v17, %v193_v12  ;;  %v244_v23 = vadd.f32 %v243_v19, %v229_v14 }
  0x52   : > { %v209_v25 = vadd.f32 %v208_v21, %v194_v16  ;;  %v245_v27 = vadd.f32 %v244_v23, %v230_v18 }
  0x54   : > { %v210_v29 = vadd.f32 %v209_v25, %v195_v20  ;;  %v246_v31 = vadd.f32 %v245_v27, %v231_v22 }
  0x56   : > { %v211_v33 = vadd.f32 %v210_v29, %v196_v24  ;;  %v247_v35 = vadd.f32 %v246_v31, %v232_v26 }
  0x58   : > { %v212_v37 = vadd.f32 %v211_v33, %v197_v28  ;;  %v248_v39 = vadd.f32 %v247_v35, %v233_v30 }
  0x5a   : > { %v213_v41 = vadd.f32 %v212_v37, %v198_v32  ;;  %v249_v43 = vadd.f32 %v248_v39, %v234_v34 }
  0x5c   : > { %v214_v45 = vadd.f32 %v213_v41, %v199_v36  ;;  %v250_v47 = vadd.f32 %v249_v43, %v235_v38 }
  0x5e   : > { %v215_v49 = vadd.f32 %v214_v45, %v200_v40  ;;  %v251_v51 = vadd.f32 %v250_v47, %v236_v42 }
  0x60   : > { %v216_v53 = vadd.f32 %v215_v49, %v201_v44  ;;  %v252_v55 = vadd.f32 %v251_v51, %v237_v46 }
  0x62   : > { %v217_v56 = vadd.f32 %v216_v53, %v202_v48  ;;  %v253_v58 = vadd.f32 %v252_v55, %v238_v50 }
  0x64   : > { %v218_v59 = vadd.f32 %v217_v56, %v203_v52  ;;  %v254_v60 = vadd.f32 %v253_v58, %v239_v54 }
  0x66   : > { %v219_v61 = vrot.slane %v218_v59, 4  ;;  %v255_v62 = vadd.f32 %v254_v60, %v240_v57 }
  0x68   : > { %v220_v63 = vadd.f32 %v219_v61, %v218_v59  ;;  %v256_v0 = vrot.slane %v255_v62, 4 }
  0x6a   : > { %v221_v1 = vrot.slane %v220_v63, 2  ;;  %v257_v2 = vadd.f32 %v256_v0, %v255_v62 }
  0x6c   : > { %v222_v3 = vadd.f32 %v221_v1, %v220_v63  ;;  %v258_v4 = vrot.slane %v257_v2, 2  ;;  %265 = sbr.rel (%p426_p7) target bundleno = 117 (0x75), region = 32 }
  0x6e   : > { %v223_v5 = vrot.slane %v222_v3, 1  ;;  %v259_v6 = vadd.f32 %v258_v4, %v257_v2 }
  0x70   : > { %v224_v7 = vadd.f32 %v223_v5, %v222_v3  ;;  %v260_v8 = vrot.slane %v259_v6, 1 }
  0x72   : > { %v261_v9 = vadd.f32 %v260_v8, %v259_v6  ;;  %266 = vst [vmem:[%s180_s28] sm:$0x1] (!%p426_p7), %v224_v7 }
  0x74   : > { %267 = vst [vmem:[%s920_s29] sm:$0x1] %v261_v9 }
  0x75 PF: > { %p427_p12 = scmp.eq.s32.totalorder %s709_s15, 0 }
  0x77   : > { %271 = sbr.rel (%p427_p12) target bundleno = 128 (0x80), region = 36 }
  0x7b   : > { %v272_v10 = vld [vmem:[%s180_s28] sm:$0x1] (!%p427_p12) }
  0x7c   : > { %v275_v11 = vld [vmem:[%s920_s29] sm:$0x1] (!%p427_p12)  ;;  %v273_v12 = vadd.f32 (!%p427_p12), %v272_v10, %v224_v7 }
  0x7d   : > { %v276_v13 = vadd.f32 (!%p427_p12), %v275_v11, %v261_v9 }
  0x7e   : > { %274 = vst [vmem:[%s180_s28] sm:$0x1] %v273_v12 }
  0x7f   : > { %277 = vst [vmem:[%s920_s29] sm:$0x1] %v276_v13 }
  0x80 PF: > { %s428_s24 = sshll.u32 %s713_s16, 4  ;;  %s295_s21 = sshll.u32 %s180_s28, 4  ;;  %s296_s21 = int_to_ptr.vmem [resolvable:$true] %s295_s21 }
  0x81   : > { %s933_s15 = scalar_lea.hbm %s1017_s1, %s428_s24  ;;  %s279_s26 = scalar_lea.sflag [#allocation4], %s900_s22 }
  0x82   : > { %s571_s12 = scalar_lea.vmem %s296_s21, 16  ;;  %p1029_p4 = scmp.ne.s32.totalorder %s1026_s3, 0 }
  0x83   : > { %p572_p2 = scmp.ne.s32.totalorder %s296_s21, %s571_s12  ;;  %s730_s23 = smov [#allocation5]  }
  0x84   : > { %s575_s20 = sshll.u32 %s730_s23, 4  ;;  %s576_s20 = int_to_ptr.vmem [resolvable:$false] %s575_s20 }
  0x85   : > { %p573_p0 = pnand %p572_p2, %p1029_p4  ;;  %s577_s25 = scalar_lea.vmem %s576_s20, 32 }
  0x86   : > { %p578_p5 = scmp.lt.s32.totalorder %s296_s21, %s576_s20  ;;  %p579_p6 = scmp.lt.s32.totalorder %s577_s25, %s571_s12 }
  0x87   : > { %p574_p1 = pneg %p573_p0 }
  0x88   : > { %p580_p9 = por %p579_p6, %p578_p5 }
  0x8a   : > { %p581_p10 = pnand %p580_p9, %p574_p1 }
  0x8c   : > { %584 = shalt.err (!%p581_p10)
}
  0x8d   : > { %s585_s30 = scalar_lea.hbm %s933_s15, 16  ;;  %s589_s8 = scalar_lea.hbm %s1017_s1, 32 }
  0x8e   : > { %p586_p11 = scmp.ne.s32.totalorder %s933_s15, %s585_s30  ;;  %p590_p13 = scmp.lt.u32.totalorder %s933_s15, %s1017_s1 }
  0x8f   : > { %p591_p7 = scmp.lt.u32.totalorder %s589_s8, %s585_s30  ;;  %p593_p2 = scmp.lt.u32.totalorder %s585_s30, %s933_s15 }
  0x90   : > { %p587_p3 = pnand %p586_p11, %p1029_p4 }
  0x91   : > { %p592_p12 = por %p591_p7, %p590_p13 }
  0x92   : > { %p588_p8 = pneg %p587_p3 }
  0x93   : > { %p594_p0 = por %p593_p2, %p592_p12 }
  0x95   : > { %p595_p1 = pnand %p594_p0, %p588_p8 }
  0x97   : > { %598 = shalt.err (!%p595_p1)
}
  0x98   : > { %434 = dma.vmem_to_hbm [thread:$0]  (%p1029_p4), %s296_s21, 16, %s933_s15, %s279_s26  }
  0x99   : > { %s958_s25 = scalar_lea.hbm %s1018_s2, %s428_s24  ;;  %s308_s7 = sshll.u32 %s920_s29, 4  ;;  %s309_s7 = int_to_ptr.vmem [resolvable:$true] %s308_s7 }
  0x9a   : > { %s283_s30 = scalar_lea.sflag [#allocation7], %s900_s22  ;;  %s599_s28 = scalar_lea.vmem %s309_s7, 16 }
  0x9b   : > { %p600_p5 = scmp.ne.s32.totalorder %s309_s7, %s599_s28  ;;  %s731_s8 = smov [#allocation6]  }
  0x9c   : > { %s603_s27 = sshll.u32 %s731_s8, 4  ;;  %s604_s27 = int_to_ptr.vmem [resolvable:$false] %s603_s27 }
  0x9d   : > { %p601_p6 = pnand %p600_p5, %p1029_p4  ;;  %s605_s23 = scalar_lea.vmem %s604_s27, 32 }
  0x9e   : > { %p606_p10 = scmp.lt.s32.totalorder %s309_s7, %s604_s27  ;;  %p607_p11 = scmp.lt.s32.totalorder %s605_s23, %s599_s28 }
  0x9f   : > { %p602_p9 = pneg %p601_p6 }
  0xa0   : > { %p608_p3 = por %p607_p11, %p606_p10 }
  0xa2   : > { %p609_p8 = pnand %p608_p3, %p602_p9 }
  0xa4   : > { %612 = shalt.err (!%p609_p8)
}
  0xa5   : > { %s613_s16 = scalar_lea.hbm %s958_s25, 16  ;;  %s617_s24 = scalar_lea.hbm %s1018_s2, 32 }
  0xa6   : > { %p614_p13 = scmp.ne.s32.totalorder %s958_s25, %s613_s16  ;;  %p618_p2 = scmp.lt.u32.totalorder %s958_s25, %s1018_s2 }
  0xa7   : > { %p619_p0 = scmp.lt.u32.totalorder %s617_s24, %s613_s16  ;;  %p621_p5 = scmp.lt.u32.totalorder %s613_s16, %s958_s25 }
  0xa8   : > { %p615_p7 = pnand %p614_p13, %p1029_p4 }
  0xa9   : > { %p620_p1 = por %p619_p0, %p618_p2 }
  0xaa   : > { %p616_p12 = pneg %p615_p7 }
  0xab   : > { %p622_p6 = por %p621_p5, %p620_p1 }
  0xad   : > { %p623_p9 = pnand %p622_p6, %p616_p12 }
  0xaf   : > { %626 = shalt.err (!%p623_p9)
}
  0xb0   : > { %435 = dma.vmem_to_hbm [thread:$0]  (%p1029_p4), %s309_s7, 16, %s958_s25, %s283_s30  }
  0xb1 PF: > { %p450_p10 = scmp.ge.s32.totalorder %s725_s19, 2  ;;  %s320_s26 = sand.u32 1, %s685_s9  }
  0xb2   : > { %p1030_p11 = scmp.ne.s32.totalorder %s1027_s6, 0  ;;  %s321_s12 = scalar_lea.sflag [#allocation4], %s320_s26 }
  0xb4   : > { %p443_p3 = pnand %p450_p10, %p1030_p11 }
  0xb6   : > { %676 = dma.done.wait (!%p443_p3), %s321_s12, 16  }
  0xb7   : > { %678 = vsyncadd (!%p443_p3), %s321_s12, 4294967280  ;;  %s329_s20 = scalar_lea.sflag [#allocation7], %s320_s26 }
  0xb8   : > { %680 = dma.done.wait (!%p443_p3), %s329_s20, 16  }
  0xb9   : > { %682 = vsyncadd (!%p443_p3), %s329_s20, 4294967280  ;;  %s22_s19 = sadd.s32 1, %s725_s19   ;;  %s1031_s3 = sld [smem:[#allocation11_spill]] }
  0xba   : > { %p19_p8 = scmp.ge.s32.totalorder %s22_s19, 6   ;;  %s1032_s6 = sld [smem:[#allocation12_spill]] }
  0xbb   : > { %s1033_s9 = smov %s689_s10  ;;  %s1034_s10 = smov %s693_s11 }
  0xbc   : > { %s1035_s11 = smov %s834_s4  ;;  %s1036_s12 = smov %s701_s13 }
  0xbd   : > { %s1037_s13 = smov %s705_s14  ;;  %s1038_s14 = smov %s837_s5 }
  0xbe   : > { %s1039_s15 = smov %s717_s17  ;;  %s1040_s16 = smov %s721_s18 }
  0xbf   : > { %s1041_s17 = smov %s1031_s3  ;;  %21 = sbr.rel (!%p19_p8) target bundleno = 11 (0xb), region = 94 }
  0xc0   : > { %s1042_s18 = smov %s1032_s6 }
  0xc6   :  { %333 = vsyncpa [#allocation3], 1 }
  0xc7   :  { %335 = vsyncpa [#allocation3 + $0x1], 1 }
  0xc8   :  { %336 = vsyncpa [#allocation4], 1 }
  0xc9   :  { %338 = vsyncpa [#allocation4 + $0x1], 1 }
  0xca   :  { %339 = vsyncpa [#allocation7], 1 }
  0xcb   :  { %341 = vsyncpa [#allocation7 + $0x1], 1 }

</bundles_post_ra>
